<compile_context>
chip_gen: v5e
topology: v5e:2x2
jax: 0.10.0
libtpu: 0.0.40
codegen_flags: <defaults>
</compile_context>

<pallas_src>
import math
from functools import partial

import jax
import jax.numpy as jnp
from jax.experimental import pallas as pl
from jax.experimental.pallas import tpu as pltpu


_MAX_TILE_P = 4096  # packed rows per grid step
_MAX_PACK = 8       # bound block-diagonal MXU overhead (safe for v5e f32 MXU)


def _round_up(n, m):
    return ((n + m - 1) // m) * m


def _choose_pack(patch_size, d_model, max_pack):
    """Smallest pack making n_out = pack*d_model a multiple of 128 (unmasked stores),
    grown toward a lane-dense K (pack*patch_size -> 128) while staying <= max_pack."""
    base = 128 // math.gcd(d_model, 128)
    if base > max(max_pack, 32):
        return 1  # pathological d_model -> masked-store fallback
    pack = base
    while pack * 2 <= max_pack and pack * patch_size < 128:
        pack *= 2
    return pack


def _patch_embed_kernel(x_ref, w_ref, b_ref, o_ref):
    # MXU matmul with f32 accumulation, then bias + ReLU on the VPU.
    acc = jnp.dot(x_ref[...], w_ref[...], preferred_element_type=jnp.float32)
    acc = acc + b_ref[...]            # (tile_p, n_out) + (1, n_out) broadcast
    o_ref[...] = jnp.maximum(acc, 0.0).astype(o_ref.dtype)


@partial(jax.jit, static_argnames=("patch_size", "max_tile_p", "max_pack"))
def patch_embedding_forward(x, weight, bias, *, patch_size,
                            max_tile_p=_MAX_TILE_P, max_pack=_MAX_PACK):
    """x: (batch, seq_len) f32; weight: (d_model, patch_size); bias: (d_model,)."""
    batch, seq_len = x.shape
    d_model = weight.shape[0]
    num_patches = seq_len // patch_size  # unfold with step == size drops the remainder
    rows = batch * num_patches

    # Lane-density packing: `pack` consecutive patches share one kernel row via a
    # block-diagonal weight, so the output block's last dim is pack*d_model (mult of 128)
    # while the HBM buffer keeps the same contiguous (rows, d_model) layout.
    pack = _choose_pack(patch_size, d_model, max_pack)
    k_in = pack * patch_size
    n_out = pack * d_model

    rows_pad = _round_up(rows, pack)      # pad only to a multiple of pack (<= pack-1 rows)
    packed_rows = rows_pad // pack

    # Tile sizing: cap at max_tile_p; when everything fits in one tile but there is more
    # than one vreg-row of work, split into 2 tiles so v7x's second TC gets a share.
    if _round_up(packed_rows, 8) <= max_tile_p:
        tile_p = _round_up(-(-packed_rows // 2), 8) if packed_rows > 8 else 8
    else:
        tile_p = max_tile_p
    grid_m = -(-packed_rows // tile_p)    # cdiv -> partial last block handled by Pallas

    # Glue (fused under this jit): unfold == reshape (step == size), tiny pad, pack rows.
    x_p = x[:, : num_patches * patch_size].reshape(rows, patch_size)
    if rows_pad != rows:
        x_p = jnp.pad(x_p, ((0, rows_pad - rows), (0, 0)))
    x_pk = x_p.reshape(packed_rows, k_in)  # contiguous view

    wt = weight.T.astype(x.dtype)          # (patch_size, d_model)
    if pack == 1:
        w_pk = wt
        b_pk = bias.reshape(1, d_model).astype(x.dtype)
    else:
        # Block-diagonal weight: w_pk[j*ps:(j+1)*ps, j*dm:(j+1)*dm] = wt
        eye = jnp.eye(pack, dtype=wt.dtype)
        w_pk = jnp.einsum("pq,kd->pkqd", eye, wt).reshape(k_in, n_out)
        b_pk = jnp.tile(bias, pack).reshape(1, n_out).astype(x.dtype)

    out = pl.pallas_call(
        _patch_embed_kernel,
        out_shape=jax.ShapeDtypeStruct((packed_rows, n_out), x.dtype),
        grid_spec=pltpu.PrefetchScalarGridSpec(
            num_scalar_prefetch=0,
            grid=(grid_m,),
            in_specs=[
                pl.BlockSpec((tile_p, k_in), lambda i: (i, 0)),   # row tile of X
                pl.BlockSpec((k_in, n_out), lambda i: (0, 0)),    # weights resident
                pl.BlockSpec((1, n_out), lambda i: (0, 0)),       # bias resident
            ],
            out_specs=pl.BlockSpec((tile_p, n_out), lambda i: (i, 0)),
        ),
        compiler_params=pltpu.CompilerParams(
            dimension_semantics=("parallel",),          # independent row tiles
            vmem_limit_bytes=32 * 1024 * 1024,          # headroom for big tiles on v5e
        ),
    )(x_pk, w_pk, b_pk)

    # Unpack is a free contiguous view of the same HBM layout; slice off row padding.
    out = out.reshape(rows_pad, d_model)[:rows]
    return out.reshape(batch, num_patches, d_model)


def _ref_forward(x, weight, bias, patch_size):
    b, s = x.shape
    npch = s // patch_size
    xu = x[:, : npch * patch_size].reshape(b, npch, patch_size)
    return jnp.maximum(jnp.einsum("bnp,dp->bnd", xu, weight) + bias, 0.0)


def _run_case(key, batch, seq_len, patch_size, d_model, **kw):
    kx, kw_, kb = jax.random.split(key, 3)
    x = jax.random.normal(kx, (batch, seq_len), dtype=jnp.float32)
    weight = jax.random.normal(kw_, (d_model, patch_size), dtype=jnp.float32) * 0.1
    bias = jax.random.normal(kb, (d_model,), dtype=jnp.float32) * 0.1

    out = patch_embedding_forward(x, weight, bias, patch_size=patch_size, **kw)
    out = jax.block_until_ready(out)

    num_patches = seq_len // patch_size
    ref = _ref_forward(x, weight, bias, patch_size)
    assert out.shape == (batch, num_patches, d_model), out.shape
    assert jnp.allclose(out, ref, atol=1e-5, rtol=1e-5), "mismatch vs reference"


if __name__ == "__main__":
    key = jax.random.PRNGKey(0)
    k1, k2, k3, k4 = jax.random.split(key, 4)

    # Case 1: shapes consistent with the module (batch=2, seq_len=64, patch=8, d_model=32).
    _run_case(k1, batch=2, seq_len=64, patch_size=8, d_model=32)

    # Case 2: non-divisible seq_len (remainder dropped), rows padded to a pack multiple,
    #         tiny tile cap -> multi-step grid with a partial last block.
    _run_case(k2, batch=2, seq_len=331, patch_size=8, d_model=32, max_tile_p=8)

    # Case 3: d_model=48 does not divide 128 -> lcm-based pack (pack=8, n_out=384),
    #         exercising the generalized lane-dense path (no masked-store fallback).
    _run_case(k3, batch=2, seq_len=40, patch_size=8, d_model=48)

    # Case 4: larger run with default tiling -> tile split so grid_m >= 2 (megacore).
    _run_case(k4, batch=4, seq_len=1024, patch_size=8, d_model=32)

    print("KERNEL_OK")
</pallas_src>

<mosaic_0001>
module attributes {stable_mosaic.version = 11 : i64} {
  func.func @_patch_embed_kernel(%arg0: i32, %arg1: memref<8x64xf32, #tpu.memory_space<vmem>>, %arg2: memref<64x256xf32, #tpu.memory_space<vmem>>, %arg3: memref<1x256xf32, #tpu.memory_space<vmem>>, %arg4: memref<8x256xf32, #tpu.memory_space<vmem>>) attributes {dimension_semantics = [#tpu.dimension_semantics<parallel>], iteration_bounds = array<i64: 1>, scalar_prefetch = 0 : i64, scratch_operands = 0 : i64, tpu.core_type = #tpu.core_type<tc>, window_params = [{transform_indices = @transform_0, window_bounds = array<i64: 8, 64>}, {pipeline_mode = #tpu.pipeline_mode<synchronous>, transform_indices = @transform_1, window_bounds = array<i64: 64, 256>}, {pipeline_mode = #tpu.pipeline_mode<synchronous>, transform_indices = @transform_2, window_bounds = array<i64: 1, 256>}, {transform_indices = @transform_3, window_bounds = array<i64: 8, 256>}]} {
    %c0 = arith.constant 0 : index
    %c0_0 = arith.constant 0 : index
    %0 = vector.load %arg1[%c0, %c0_0] : memref<8x64xf32, #tpu.memory_space<vmem>>, vector<8x64xf32>
    %c0_1 = arith.constant 0 : index
    %c0_2 = arith.constant 0 : index
    %1 = vector.load %arg2[%c0_1, %c0_2] : memref<64x256xf32, #tpu.memory_space<vmem>>, vector<64x256xf32>
    %cst = arith.constant dense<0.000000e+00> : vector<8x256xf32>
    %2 = tpu.matmul %0, %1, %cst {dimension_numbers = #tpu.dot_dimension_numbers<[1], [0], [0], [1], [0, 0, 1, 1], [], []>} : vector<8x64xf32>, vector<64x256xf32>, vector<8x256xf32> -> vector<8x256xf32>
    %c0_3 = arith.constant 0 : index
    %c0_4 = arith.constant 0 : index
    %3 = vector.load %arg3[%c0_3, %c0_4] : memref<1x256xf32, #tpu.memory_space<vmem>>, vector<1x256xf32>
    %4 = vector.broadcast %3 : vector<1x256xf32> to vector<8x256xf32>
    %5 = arith.addf %2, %4 : vector<8x256xf32>
    %cst_5 = arith.constant 0.000000e+00 : f32
    %6 = vector.broadcast %cst_5 : f32 to vector<8x256xf32>
    %7 = arith.maximumf %5, %6 : vector<8x256xf32>
    %c0_6 = arith.constant 0 : index
    %c0_7 = arith.constant 0 : index
    %8 = vector.load %arg4[%c0_6, %c0_7] : memref<8x256xf32, #tpu.memory_space<vmem>>, vector<8x256xf32>
    tpu.vector_store %arg4[%c0_6, %c0_7], %7 {strides = array<i32>} : memref<8x256xf32, #tpu.memory_space<vmem>>, vector<8x256xf32>,
    return
  }
  func.func @transform_0(%arg0: i32) -> (i32, i32) {
    %c0_i32 = arith.constant 0 : i32
    %c0_i32_0 = arith.constant 0 : i32
    return %arg0, %c0_i32 : i32, i32
  }
  func.func @transform_1(%arg0: i32) -> (i32, i32) {
    %c0_i32 = arith.constant 0 : i32
    %c0_i32_0 = arith.constant 0 : i32
    %c0_i32_1 = arith.constant 0 : i32
    return %c0_i32, %c0_i32_0 : i32, i32
  }
  func.func @transform_2(%arg0: i32) -> (i32, i32) {
    %c0_i32 = arith.constant 0 : i32
    %c0_i32_0 = arith.constant 0 : i32
    %c0_i32_1 = arith.constant 0 : i32
    return %c0_i32, %c0_i32_0 : i32, i32
  }
  func.func @transform_3(%arg0: i32) -> (i32, i32) {
    %c0_i32 = arith.constant 0 : i32
    %c0_i32_0 = arith.constant 0 : i32
    return %arg0, %c0_i32 : i32, i32
  }
}

</mosaic_0001>

<bundles_post_ra>
// kernel: tile.8
= control target key start
LH: loop header
LB: loop body
LE: loop exit
PB: predicated region body
PF: predicated region fallthrough
CT: control target
= control target key end

     0   :  { %s22_s0 = inlined_call_operand.vmem [shape: f32[32], index: 0, kind: input, shape index: {}]   ;;  %s23_s1 = inlined_call_operand.vmem [shape: f32[8,32], index: 1, kind: output, shape index: {}]  }
   0x1   :  { %v4_v0 = vld [vmem:[%s22_s0] ss:$0 sm:$0xff] }
   0x2   :  { %5 = vst [vmem:[%s23_s1] sm:$0xff] %v4_v0 }

// kernel: tile.9
= control target key start
LH: loop header
LB: loop body
LE: loop exit
PB: predicated region body
PF: predicated region fallthrough
CT: control target
= control target key end

     0   :  { %s7_s6 = smov 3  ;;  %s46_s9 = smov 96   ;;  %vm4_vm0 = vcmask 261120   ;;  %vm11_vm1 = vcmask 1048320   ;;  %vm18_vm2 = vcmask 785920   ;;  %vm25_vm3 = vcmask 523520   ;;  %s77_s0 = inlined_call_operand.vmem [shape: f32[8,32], index: 0, kind: input, shape index: {}]   ;;  %s78_s1 = inlined_call_operand.vmem [shape: f32[1,256], index: 1, kind: output, shape index: {}]  }
   0x1   :  { %v39_v0 = vld [vmem:[%s77_s0 + $0x3] ss:$4 sm:%s7_s6]   ;;  %s21_s10 = smov 3  ;;  %s14_s13 = smov 3 }
   0x2   :  { %9 = vrot.lane.b32.xlu0 %v39_v0, %s46_s9  ;;  %v41_v1 = vld [vmem:[%s77_s0 + $0x1] ss:$4 sm:%s21_s10]   ;;  %s47_s14 = smov 32   ;;  %s48_s17 = smov 64  }
   0x3   :  { %23 = vrot.lane.b32.xlu1 %v41_v1, %s47_s14  ;;  %v40_v2 = vld [vmem:[%s77_s0 + $0x2] ss:$4 sm:%s14_s13]   ;;  %s2_s18 = smov 3 }
   0x4   :  { %v3_v3 = vld [vmem:[%s77_s0] ss:$4 sm:%s2_s18]  }
   0x5   :  { %5 = vst.msk [vmem:[#allocation0] ss:$8 sm:$0x3] %vm4_vm0, %v3_v3  }
   0xa   :  { %16 = vrot.lane.b32.xlu0 %v40_v2, %s48_s17 }
  0x74   :  { %v10_v4 = vpop.permute.xlu0 %9  }
  0x75   :  { %12 = vst.msk [vmem:[#allocation0] ss:$8 sm:$0x3] %vm11_vm1, %v10_v4   ;;  %v24_v5 = vpop.permute.xlu1 %23  }
  0x7c   :  { %v17_v6 = vpop.permute.xlu0 %16  }
  0x7d   :  { %19 = vst.msk [vmem:[#allocation0] ss:$8 sm:$0x3] %vm18_vm2, %v17_v6  }
  0x7e   :  { %26 = vst.msk [vmem:[#allocation0] ss:$8 sm:$0x3] %vm25_vm3, %v24_v5  }
  0x85   :  { %v29_v7 = vld [vmem:[#allocation0] sm:$0x1]  ;;  %v34_v8 = vld [vmem:[#allocation0 + $0x8] sm:$0x1] }
  0x86   :  { %32 = vst [vmem:[%s78_s1] sm:$0x1] %v29_v7 }
  0x87   :  { %42 = vst [vmem:[%s78_s1 + $0x1] sm:$0x1] %v34_v8 }

// kernel: patch_embedding_forward.1
= control target key start
LH: loop header
LB: loop body
LE: loop exit
PB: predicated region body
PF: predicated region fallthrough
CT: control target
= control target key end

     0   :  { %vm37_vm0 = vcmask 523264   ;;  %vm86_vm1 = vcmask 1041408   ;;  %s225_s0 = inlined_call_operand.vmem [shape: f32[2,64], index: 0, kind: input, shape index: {}]   ;;  %s226_s1 = inlined_call_operand.vmem [shape: f32[64,256], index: 1, kind: input, shape index: {}]   ;;  %s227_s2 = inlined_call_operand.vmem [shape: f32[1,256], index: 2, kind: input, shape index: {}]   ;;  %s228_s3 = inlined_call_operand.vmem [shape: f32[2,256], index: 3, kind: output, shape index: {}]  }
   0x1   :  { %v30_v0 = vld [vmem:[%s226_s1 + $0x78] sm:$0xff]  ;;  %v29_v1 = vld [vmem:[%s226_s1 + $0x70] sm:$0xff]  ;;  %v28_v2 = vld [vmem:[%s226_s1 + $0x68] sm:$0xff] }
   0x2   :  { %69 = vmatpush.msra.mxu1 %v30_v0  ;;  %49 = vmatpush.msra.mxu0 %v29_v1  ;;  %v27_v3 = vld [vmem:[%s226_s1 + $0x60] sm:$0xff]  ;;  %v26_v4 = vld [vmem:[%s226_s1 + $0x58] sm:$0xff]  ;;  %v25_v5 = vld [vmem:[%s226_s1 + $0x50] sm:$0xff] }
   0x3   :  { %v24_v6 = vld [vmem:[%s226_s1 + $0x48] sm:$0xff]  ;;  %v23_v7 = vld [vmem:[%s226_s1 + $0x40] sm:$0xff]  ;;  %v22_v8 = vld [vmem:[%s226_s1 + $0x38] sm:$0xff] }
   0x4   :  { %70 = vmatpush.msra.mxu1 %v28_v2  ;;  %50 = vmatpush.msra.mxu0 %v27_v3  ;;  %v21_v9 = vld [vmem:[%s226_s1 + $0x30] sm:$0xff]  ;;  %v20_v10 = vld [vmem:[%s226_s1 + $0x28] sm:$0xff]  ;;  %v19_v11 = vld [vmem:[%s226_s1 + $0x20] sm:$0xff] }
   0x5   :  { %v18_v12 = vld [vmem:[%s226_s1 + $0x18] sm:$0xff]  ;;  %v17_v13 = vld [vmem:[%s226_s1 + $0x10] sm:$0xff]  ;;  %v16_v14 = vld [vmem:[%s226_s1 + $0x8] sm:$0xff] }
   0x6   :  { %71 = vmatpush.msra.mxu1 %v26_v4  ;;  %51 = vmatpush.msra.mxu0 %v25_v5  ;;  %v15_v15 = vld [vmem:[%s226_s1] sm:$0xff] }
   0x7   :  { %v14_v16 = vld [vmem:[%s225_s0] sm:$0xff] }
   0x8   :  { %72 = vmatpush.msra.mxu1 %v24_v6  ;;  %52 = vmatpush.msra.mxu0 %v23_v7  ;;  %v31_v17 = vld [vmem:[%s227_s2] sm:$0x3] }
   0x9   :  { %v34_v18 = vperm.slane %v31_v17, 1  ;;  %v33_v19 = vperm.slane %v31_v17, 0 }
   0xa   :  { %73 = vmatpush.msra.mxu1 %v22_v8  ;;  %53 = vmatpush.msra.mxu0 %v21_v9 }
   0xc   :  { %74 = vmatpush.msra.mxu1 %v20_v10  ;;  %54 = vmatpush.msra.mxu0 %v19_v11 }
   0xe   :  { %75 = vmatpush.msra.mxu1 %v18_v12  ;;  %55 = vmatpush.msra.mxu0 %v17_v13 }
  0x10   :  { %76 = vmatpush.msra.mxu1 %v16_v14  ;;  %56 = vmatpush.msra.mxu0 %v15_v15 }
  0x11   :  { %147 = vmatmul.msk.f32.vlgmr.msra.gmra.mxu1 %vm37_vm0, %v14_v16  ;;  %146 = vmatmul.msk.f32.vlgmr.msra.gmra.mxu0 %vm37_vm0, %v14_v16 }
  0x8e   :  { %v78_v20 = vpop.f32.mrf.mxu1  ;;  %v58_v21 = vpop.f32.mrf.mxu0 }
  0x8f   :  { %v79_v22 = vadd.f32 %v78_v20, %v34_v18  ;;  %v59_v23 = vadd.f32 %v58_v21, %v33_v19 }
  0x91   :  { %v82_v24 = vmax.f32 %v79_v22, 0.0  ;;  %v81_v25 = vmax.f32 %v59_v23, 0.0 }
  0x93   :  { %v85_v26 = vrot.slane %v82_v24, 6 }
  0x95   :  { %v87_v27 = vsel %vm86_vm1, %v81_v25, %v85_v26 }
  0x96   :  { %101 = vst [vmem:[#allocation2] sm:$0xf] %v87_v27 }
  0x9d   :  { %v123_v28 = vld [vmem:[#allocation2] sm:$0xf] }
  0x9e   :  { %124 = vst [vmem:[%s228_s3] sm:$0xf] %v123_v28 }

</bundles_post_ra>
